<compile_context>
chip_gen: v6e
topology: v6e:2x2x1
jax: 0.10.0
libtpu: 0.0.40
codegen_flags: <defaults>
</compile_context>

<pallas_src>
import math

import jax
import jax.numpy as jnp
from jax.experimental import pallas as pl
from jax.experimental.pallas import tpu as pltpu


# ----------------------------------------------------------------------------
# In-kernel MLP stack (shared by the encode-only and the fused kernels).
# ----------------------------------------------------------------------------
def _run_stack(h, w_refs, b_pack_ref, dims, matmul_dtype):
    """h: (TB, dims[0]) f32 value. Returns (TB, dims[-1]) f32 value."""
    n = len(dims) - 1
    for l in range(n):
        w = w_refs[l][...]
        a = h
        if matmul_dtype is not None:
            a = a.astype(matmul_dtype)
            w = w.astype(matmul_dtype)
        out_dim = dims[l + 1]
        b = b_pack_ref[l:l + 1, :out_dim]          # (1, out_dim) f32, broadcasts
        h = jnp.dot(a, w, preferred_element_type=jnp.float32) + b
        if l < n - 1:                              # ReLU on hidden layers only
            h = jnp.maximum(h, 0.0)
    return h


def _make_mlp_kernel(dims, matmul_dtype):
    n = len(dims) - 1

    def kernel(*refs):
        x_ref = refs[0]
        w_refs = refs[1:1 + n]
        b_ref = refs[1 + n]
        o_ref = refs[-1]
        h = x_ref[...].astype(jnp.float32)
        h = _run_stack(h, w_refs, b_ref, dims, matmul_dtype)
        o_ref[...] = h.astype(o_ref.dtype)

    return kernel


def _make_fused_kernel(enc_dims, dec_dims, matmul_dtype):
    n_enc = len(enc_dims) - 1
    n_dec = len(dec_dims) - 1

    def kernel(*refs):
        idx = 0
        x_ref = refs[idx]; idx += 1
        enc_w = refs[idx:idx + n_enc]; idx += n_enc
        enc_b = refs[idx]; idx += 1
        dec_w = refs[idx:idx + n_dec]; idx += n_dec
        dec_b = refs[idx]; idx += 1
        lat_ref = refs[idx]
        rec_ref = refs[idx + 1]

        h = x_ref[...].astype(jnp.float32)
        z = _run_stack(h, enc_w, enc_b, enc_dims, matmul_dtype)
        lat_ref[...] = z.astype(lat_ref.dtype)      # latent never touches HBM twice
        r = _run_stack(z, dec_w, dec_b, dec_dims, matmul_dtype)
        rec_ref[...] = r.astype(rec_ref.dtype)

    return kernel


# ----------------------------------------------------------------------------
# Wrappers: batch-tiled pallas_call with VMEM-resident parameters.
# ----------------------------------------------------------------------------
_COMPILER_PARAMS = pltpu.CompilerParams(dimension_semantics=("parallel",))


def _choose_tb(batch, tb):
    # Full-batch block when small (block == full dim satisfies tiling rules);
    # otherwise TB (multiple of 8 for f32, of 16 for bf16) fills the MXU rows.
    return batch if batch <= tb else tb


def _param_specs(arrays):
    # Constant index_map -> parameters are fetched once and stay VMEM-resident
    # across all batch tiles.
    return [pl.BlockSpec(a.shape, lambda i: (0, 0)) for a in arrays]


def mlp_forward_pallas(x, weights, bias_pack, dims, *, tb=256, matmul_dtype=None):
    """Single MLP stack (used for encode / decode)."""
    batch = x.shape[0]
    in_dim, out_dim = dims[0], dims[-1]
    tb = _choose_tb(batch, tb)
    grid = (pl.cdiv(batch, tb),)

    kernel = _make_mlp_kernel(dims, matmul_dtype)
    in_specs = ([pl.BlockSpec((tb, in_dim), lambda i: (i, 0))]
                + _param_specs(weights)
                + _param_specs([bias_pack]))

    return pl.pallas_call(
        kernel,
        out_shape=jax.ShapeDtypeStruct((batch, out_dim), x.dtype),
        grid=grid,
        in_specs=in_specs,
        out_specs=pl.BlockSpec((tb, out_dim), lambda i: (i, 0)),
        compiler_params=_COMPILER_PARAMS,
    )(x, *weights, bias_pack)


def autoencoder_fused_pallas(x, enc_w, enc_b_pack, enc_dims,
                             dec_w, dec_b_pack, dec_dims,
                             *, tb=256, matmul_dtype=None):
    """Fused encode+decode: one pallas_call, latent kept on-chip."""
    batch = x.shape[0]
    in_dim = enc_dims[0]
    lat_dim = enc_dims[-1]
    rec_dim = dec_dims[-1]
    tb = _choose_tb(batch, tb)
    grid = (pl.cdiv(batch, tb),)

    kernel = _make_fused_kernel(enc_dims, dec_dims, matmul_dtype)
    in_specs = ([pl.BlockSpec((tb, in_dim), lambda i: (i, 0))]
                + _param_specs(enc_w) + _param_specs([enc_b_pack])
                + _param_specs(dec_w) + _param_specs([dec_b_pack]))
    out_specs = (pl.BlockSpec((tb, lat_dim), lambda i: (i, 0)),
                 pl.BlockSpec((tb, rec_dim), lambda i: (i, 0)))
    out_shape = (jax.ShapeDtypeStruct((batch, lat_dim), x.dtype),
                 jax.ShapeDtypeStruct((batch, rec_dim), x.dtype))

    return pl.pallas_call(
        kernel,
        out_shape=out_shape,
        grid=grid,
        in_specs=in_specs,
        out_specs=out_specs,
        compiler_params=_COMPILER_PARAMS,
    )(x, *enc_w, enc_b_pack, *dec_w, dec_b_pack)


# ----------------------------------------------------------------------------
# Parameter construction (deterministic, PyTorch-nn.Linear-style init).
# ----------------------------------------------------------------------------
def _init_linear(key, in_dim, out_dim, dtype=jnp.float32):
    kw, kb = jax.random.split(key)
    bound = 1.0 / math.sqrt(in_dim)
    w = jax.random.uniform(kw, (in_dim, out_dim), dtype, -bound, bound)
    b = jax.random.uniform(kb, (out_dim,), dtype, -bound, bound)
    return w, b


def make_mlp_params(key, input_size, output_size, layer_sizes):
    dims = [input_size] + list(layer_sizes) + [output_size]
    weights, biases = [], []
    for i in range(len(dims) - 1):
        key, sub = jax.random.split(key)
        w, b = _init_linear(sub, dims[i], dims[i + 1])
        weights.append(w)
        biases.append(b)
    return weights, biases, dims


def _pack_biases(biases, dims):
    """Pack per-layer biases into one contiguous zero-padded f32 slab."""
    n = len(biases)
    max_w = max(dims[1:])
    pack = jnp.zeros((n, max_w), jnp.float32)
    for l, b in enumerate(biases):
        pack = pack.at[l, :b.shape[0]].set(b.astype(jnp.float32))
    return pack


class AutoEncoderPallas:
    """JAX/Pallas counterpart of AutoEncoder (forward == encode)."""

    def __init__(self, key, input_size, output_size, layer_sizes,
                 tb=256, matmul_dtype=None):
        # matmul_dtype=jnp.bfloat16 (with TB a multiple of 16) is the right
        # choice at realistic layer widths; f32 keeps the toy sizes exact.
        self.tb = tb
        self.matmul_dtype = matmul_dtype

        k_enc, k_dec = jax.random.split(key)
        self.enc_w, self.enc_b_list, self.enc_dims = make_mlp_params(
            k_enc, input_size, output_size, layer_sizes)
        self.dec_w, self.dec_b_list, self.dec_dims = make_mlp_params(
            k_dec, output_size, input_size, layer_sizes[::-1])
        self.enc_b_pack = _pack_biases(self.enc_b_list, self.enc_dims)
        self.dec_b_pack = _pack_biases(self.dec_b_list, self.dec_dims)

    def encode(self, x):
        return mlp_forward_pallas(x, self.enc_w, self.enc_b_pack, self.enc_dims,
                                  tb=self.tb, matmul_dtype=self.matmul_dtype)

    def decode(self, h):
        return mlp_forward_pallas(h, self.dec_w, self.dec_b_pack, self.dec_dims,
                                  tb=self.tb, matmul_dtype=self.matmul_dtype)

    def reconstruct(self, x):
        """Fused encode+decode in one pallas_call -> (latent, reconstruction)."""
        return autoencoder_fused_pallas(
            x, self.enc_w, self.enc_b_pack, self.enc_dims,
            self.dec_w, self.dec_b_pack, self.dec_dims,
            tb=self.tb, matmul_dtype=self.matmul_dtype)

    def __call__(self, x):
        # forward() of the PyTorch module returns encode(x).
        return self.encode(x)


# ----------------------------------------------------------------------------
# Pure-JAX reference for correctness checking.
# ----------------------------------------------------------------------------
def mlp_forward_ref(x, weights, biases):
    h = x.astype(jnp.float32)
    n = len(weights)
    for l, (w, b) in enumerate(zip(weights, biases)):
        h = h @ w + b
        if l < n - 1:
            h = jnp.maximum(h, 0.0)
    return h.astype(x.dtype)


if __name__ == "__main__":
    key = jax.random.PRNGKey(0)
    k_model, k_x = jax.random.split(key)

    # Small shapes consistent with the module:
    # AutoEncoder(input_size=16, output_size=8, layer_sizes=[32, 16]), batch=8.
    input_size, output_size, layer_sizes = 16, 8, [32, 16]
    batch = 8

    model = AutoEncoderPallas(k_model, input_size, output_size, layer_sizes)
    x = jax.random.normal(k_x, (batch, input_size), jnp.float32)

    # forward == encode (single batch-gridded pallas_call)
    out = jax.block_until_ready(model(x))
    ref_lat = mlp_forward_ref(x, model.enc_w, model.enc_b_list)
    assert out.shape == (batch, output_size)
    assert jnp.allclose(out, ref_lat, atol=1e-5, rtol=1e-5)

    # fused encode+decode path (one pallas_call, latent stays on-chip)
    lat, rec = model.reconstruct(x)
    lat = jax.block_until_ready(lat)
    rec = jax.block_until_ready(rec)
    ref_rec = mlp_forward_ref(ref_lat, model.dec_w, model.dec_b_list)
    assert lat.shape == (batch, output_size)
    assert rec.shape == (batch, input_size)
    assert jnp.allclose(lat, ref_lat, atol=1e-5, rtol=1e-5)
    assert jnp.allclose(rec, ref_rec, atol=1e-5, rtol=1e-5)

    # standalone decode path still works
    dec = jax.block_until_ready(model.decode(out))
    assert dec.shape == (batch, input_size)
    assert jnp.allclose(dec, ref_rec, atol=1e-5, rtol=1e-5)

    print("KERNEL_OK")
</pallas_src>

<mosaic_0001>
module attributes {stable_mosaic.version = 11 : i64} {
  func.func @kernel(%arg0: i32, %arg1: memref<8x16xf32, #tpu.memory_space<vmem>>, %arg2: memref<16x32xf32, #tpu.memory_space<vmem>>, %arg3: memref<32x16xf32, #tpu.memory_space<vmem>>, %arg4: memref<16x8xf32, #tpu.memory_space<vmem>>, %arg5: memref<3x32xf32, #tpu.memory_space<vmem>>, %arg6: memref<8x8xf32, #tpu.memory_space<vmem>>) attributes {dimension_semantics = [#tpu.dimension_semantics<parallel>], iteration_bounds = array<i64: 1>, scalar_prefetch = 0 : i64, scratch_operands = 0 : i64, tpu.core_type = #tpu.core_type<tc>, window_params = [{transform_indices = @transform_0, window_bounds = array<i64: 8, 16>}, {pipeline_mode = #tpu.pipeline_mode<synchronous>, transform_indices = @transform_1, window_bounds = array<i64: 16, 32>}, {pipeline_mode = #tpu.pipeline_mode<synchronous>, transform_indices = @transform_2, window_bounds = array<i64: 32, 16>}, {pipeline_mode = #tpu.pipeline_mode<synchronous>, transform_indices = @transform_3, window_bounds = array<i64: 16, 8>}, {pipeline_mode = #tpu.pipeline_mode<synchronous>, transform_indices = @transform_4, window_bounds = array<i64: 3, 32>}, {transform_indices = @transform_5, window_bounds = array<i64: 8, 8>}]} {
    %c0 = arith.constant 0 : index
    %c0_0 = arith.constant 0 : index
    %0 = vector.load %arg1[%c0, %c0_0] : memref<8x16xf32, #tpu.memory_space<vmem>>, vector<8x16xf32>
    %c0_1 = arith.constant 0 : index
    %c0_2 = arith.constant 0 : index
    %1 = vector.load %arg2[%c0_1, %c0_2] : memref<16x32xf32, #tpu.memory_space<vmem>>, vector<16x32xf32>
    %c0_3 = arith.constant 0 : index
    %c0_4 = arith.constant 0 : index
    %2 = vector.load %arg5[%c0_3, %c0_4] : memref<3x32xf32, #tpu.memory_space<vmem>>, vector<1x32xf32>
    %cst = arith.constant dense<0.000000e+00> : vector<8x32xf32>
    %3 = tpu.matmul %0, %1, %cst {dimension_numbers = #tpu.dot_dimension_numbers<[1], [0], [0], [1], [0, 0, 1, 1], [], []>} : vector<8x16xf32>, vector<16x32xf32>, vector<8x32xf32> -> vector<8x32xf32>
    %4 = vector.broadcast %2 : vector<1x32xf32> to vector<8x32xf32>
    %5 = arith.addf %3, %4 : vector<8x32xf32>
    %cst_5 = arith.constant 0.000000e+00 : f32
    %6 = vector.broadcast %cst_5 : f32 to vector<8x32xf32>
    %7 = arith.maximumf %5, %6 : vector<8x32xf32>
    %c0_6 = arith.constant 0 : index
    %c0_7 = arith.constant 0 : index
    %8 = vector.load %arg3[%c0_6, %c0_7] : memref<32x16xf32, #tpu.memory_space<vmem>>, vector<32x16xf32>
    %c1 = arith.constant 1 : index
    %c0_8 = arith.constant 0 : index
    %9 = vector.load %arg5[%c1, %c0_8] : memref<3x32xf32, #tpu.memory_space<vmem>>, vector<1x16xf32>
    %cst_9 = arith.constant dense<0.000000e+00> : vector<8x16xf32>
    %10 = tpu.matmul %7, %8, %cst_9 {dimension_numbers = #tpu.dot_dimension_numbers<[1], [0], [0], [1], [0, 0, 1, 1], [], []>} : vector<8x32xf32>, vector<32x16xf32>, vector<8x16xf32> -> vector<8x16xf32>
    %11 = vector.broadcast %9 : vector<1x16xf32> to vector<8x16xf32>
    %12 = arith.addf %10, %11 : vector<8x16xf32>
    %cst_10 = arith.constant 0.000000e+00 : f32
    %13 = vector.broadcast %cst_10 : f32 to vector<8x16xf32>
    %14 = arith.maximumf %12, %13 : vector<8x16xf32>
    %c0_11 = arith.constant 0 : index
    %c0_12 = arith.constant 0 : index
    %15 = vector.load %arg4[%c0_11, %c0_12] : memref<16x8xf32, #tpu.memory_space<vmem>>, vector<16x8xf32>
    %c2 = arith.constant 2 : index
    %c0_13 = arith.constant 0 : index
    %16 = vector.load %arg5[%c2, %c0_13] : memref<3x32xf32, #tpu.memory_space<vmem>>, vector<1x8xf32>
    %cst_14 = arith.constant dense<0.000000e+00> : vector<8x8xf32>
    %17 = tpu.matmul %14, %15, %cst_14 {dimension_numbers = #tpu.dot_dimension_numbers<[1], [0], [0], [1], [0, 0, 1, 1], [], []>} : vector<8x16xf32>, vector<16x8xf32>, vector<8x8xf32> -> vector<8x8xf32>
    %18 = vector.broadcast %16 : vector<1x8xf32> to vector<8x8xf32>
    %19 = arith.addf %17, %18 : vector<8x8xf32>
    %c0_15 = arith.constant 0 : index
    %c0_16 = arith.constant 0 : index
    %20 = vector.load %arg6[%c0_15, %c0_16] : memref<8x8xf32, #tpu.memory_space<vmem>>, vector<8x8xf32>
    tpu.vector_store %arg6[%c0_15, %c0_16], %19 {strides = array<i32>} : memref<8x8xf32, #tpu.memory_space<vmem>>, vector<8x8xf32>,
    return
  }
  func.func @transform_0(%arg0: i32) -> (i32, i32) {
    %c0_i32 = arith.constant 0 : i32
    %c0_i32_0 = arith.constant 0 : i32
    return %arg0, %c0_i32 : i32, i32
  }
  func.func @transform_1(%arg0: i32) -> (i32, i32) {
    %c0_i32 = arith.constant 0 : i32
    %c0_i32_0 = arith.constant 0 : i32
    %c0_i32_1 = arith.constant 0 : i32
    return %c0_i32, %c0_i32_0 : i32, i32
  }
  func.func @transform_2(%arg0: i32) -> (i32, i32) {
    %c0_i32 = arith.constant 0 : i32
    %c0_i32_0 = arith.constant 0 : i32
    %c0_i32_1 = arith.constant 0 : i32
    return %c0_i32, %c0_i32_0 : i32, i32
  }
  func.func @transform_3(%arg0: i32) -> (i32, i32) {
    %c0_i32 = arith.constant 0 : i32
    %c0_i32_0 = arith.constant 0 : i32
    %c0_i32_1 = arith.constant 0 : i32
    return %c0_i32, %c0_i32_0 : i32, i32
  }
  func.func @transform_4(%arg0: i32) -> (i32, i32) {
    %c0_i32 = arith.constant 0 : i32
    %c0_i32_0 = arith.constant 0 : i32
    %c0_i32_1 = arith.constant 0 : i32
    return %c0_i32, %c0_i32_0 : i32, i32
  }
  func.func @transform_5(%arg0: i32) -> (i32, i32) {
    %c0_i32 = arith.constant 0 : i32
    %c0_i32_0 = arith.constant 0 : i32
    return %arg0, %c0_i32 : i32, i32
  }
}

</mosaic_0001>

<bundles_post_ra>
// kernel: tpu_custom_call.1
= control target key start
LH: loop header
LB: loop body
LE: loop exit
PB: predicated region body
PF: predicated region fallthrough
CT: control target
= control target key end

     0   :  { %v351_v1 = vmov 0.0   ;;  %vm352_vm0 = vmmov 0   ;;  %s425_s0 = inlined_call_operand.vmem [shape: f32[8,16], index: 0, kind: input, shape index: {}]   ;;  %s426_s1 = inlined_call_operand.vmem [shape: f32[16,32], index: 1, kind: input, shape index: {}]   ;;  %s427_s2 = inlined_call_operand.vmem [shape: f32[32,16], index: 2, kind: input, shape index: {}]   ;;  %s428_s3 = inlined_call_operand.vmem [shape: f32[16,8], index: 3, kind: input, shape index: {}]   ;;  %s429_s4 = inlined_call_operand.vmem [shape: f32[3,32], index: 4, kind: input, shape index: {}]   ;;  %s430_s5 = inlined_call_operand.hbm [shape: f32[8,8], index: 5, kind: output, shape index: {}]  }
   0x1   :  { %v23_v0 = vld [vmem:[%s426_s1 + $0x8] sm:$0xff]  ;;  %301 = vmatprep.subr.mxu0 %v351_v1  ;;  %v22_v2 = vld [vmem:[%s426_s1] sm:$0xff]  ;;  %305 = vmatprep.mubr.msk.f32.mxu0 %vm352_vm0, %v351_v1  ;;  %v107_v3 = vld [vmem:[%s427_s2 + $0x18] sm:$0xff] }
   0x2   :  { %10 = vsyncpa [#allocation3], 0  ;;  %302 = vmatpush3.msra.mxu0 %v23_v0  ;;  %v21_v4 = vld [vmem:[%s425_s0] sm:$0xff]  ;;  %vm29_vm1 = vcmask 130048   ;;  %308 = vmatprep.subr.mxu1 %v351_v1  ;;  %v106_v5 = vld [vmem:[%s427_s2 + $0x10] sm:$0xff]  ;;  %vm113_vm2 = vcmask 261120  }
   0x3   :  { %303 = vmatprep.subr.mxu0 %v351_v1  ;;  %309 = vmatpush3.msra.mxu1 %v107_v3  ;;  %v105_v6 = vld [vmem:[%s427_s2 + $0x8] sm:$0xff]  ;;  %v104_v7 = vld [vmem:[%s427_s2] sm:$0xff]  ;;  %s353_s14 = smov [#allocation2]   ;;  %vm268_vm3 = vcmask 64512  }
   0x4   :  { %304 = vmatpush3.msra.mxu0 %v22_v2  ;;  %310 = vmatprep.subr.mxu1 %v351_v1  ;;  %v284_v8 = vld [vmem:[%s429_s4] ss:$0 sm:$0xff]  ;;  %v189_v13 = vld [vmem:[%s428_s3 + $0x8] sm:$0xff]  ;;  %v286_v15 = vld [vmem:[%s429_s4 + $0x1] ss:$0 sm:$0xff]  ;;  %s276_s15 = sshll.u32 %s353_s14, 4  ;;  %s277_s15 = int_to_ptr.vmem [resolvable:$true] %s276_s15 }
   0x5   :  { %306 = vmatmul.mubr.msk.f32.vlgmr.msra.gmra.mxu0 %vm29_vm1, %v21_v4  ;;  %316 = vmatprep.mubr.msk.f32.mxu1 %vm352_vm0, %v351_v1  ;;  %v188_v14 = vld [vmem:[%s428_s3] sm:$0xff]  ;;  %s329_s3 = scalar_lea.vmem %s277_s15, 128  ;;  %p334_p1 = scmp.lt.s32.totalorder %s277_s15, %s277_s15 }
   0x6   :  { %319 = vmatprep.subr.mxu0 %v351_v1  ;;  %323 = vmatprep.mubr.msk.f32.mxu0 %vm352_vm0, %v351_v1  ;;  %v288_v20 = vld [vmem:[%s429_s4 + $0x2] ss:$0 sm:$0xff]  ;;  %p330_p0 = scmp.ne.s32.totalorder %s277_s15, %s329_s3  ;;  %p335_p2 = scmp.lt.s32.totalorder %s329_s3, %s329_s3 }
   0x7   :  { %311 = vmatpush3.msra.mxu1 %v106_v5  ;;  %320 = vmatpush3.msra.mxu0 %v189_v13 }
   0x8   :  { %312 = vmatprep.subr.mxu1 %v351_v1  ;;  %321 = vmatprep.subr.mxu0 %v351_v1  ;;  %p336_p3 = por %p335_p2, %p334_p1 }
   0x9   :  { %313 = vmatpush3.msra.mxu1 %v105_v6  ;;  %322 = vmatpush3.msra.mxu0 %v188_v14 }
   0xa   :  { %314 = vmatprep.subr.mxu1 %v351_v1  ;;  %p337_p4 = pnand %p336_p3, %p330_p0 }
   0xb   :  { %315 = vmatpush3.msra.mxu1 %v104_v7 }
  0xc5   :  { %v99_v9 = vpop.f32.mrf.mxu0 }
  0xc6   :  { %v100_v10 = vadd.f32 %v284_v8, %v99_v9 }
  0xc7   :  { %v307_v11 = vpop.f32.mrf.mxu0 }
  0xc8   :  { %v103_v12 = vmax.f32 %v100_v10, 0.0 }
  0xca   :  { %317 = vmatmul.mubr.msk.f32.vlgmr.msra.gmra.mxu1 %vm113_vm2, %v103_v12 }
 0x18a   :  { %v183_v16 = vpop.f32.mrf.mxu1 }
 0x18b   :  { %v184_v17 = vadd.f32 %v286_v15, %v183_v16 }
 0x18c   :  { %v318_v18 = vpop.f32.mrf.mxu1 }
 0x18d   :  { %v187_v19 = vmax.f32 %v184_v17, 0.0 }
 0x18f   :  { %324 = vmatmul.mubr.msk.f32.vlgmr.msra.gmra.mxu0 %vm29_vm1, %v187_v19 }
 0x24f   :  { %v264_v21 = vpop.f32.mrf.mxu0 }
 0x250   :  { %v265_v22 = vadd.f32 %v288_v20, %v264_v21 }
 0x251   :  { %v325_v23 = vpop.f32.mrf.mxu0 }
 0x252   :  { %269 = vst.msk [vmem:[#allocation2] sm:$0xff] %vm268_vm3, %v265_v22 }
 0x253   :  { %340 = shalt.err (!%p337_p4)
}
 0x254   :  { %279 = dma.vmem_to_hbm [thread:$0]  %s277_s15, 128, %s430_s5, [#allocation3]  }
 0x255   :  { %349 = dma.done.wait [#allocation3], 128  }
 0x256   :  { %350 = vsyncadd [#allocation3], 4294967168 }
 0x257   :  { %283 = vsyncpa [#allocation3], 1 }

</bundles_post_ra>
